<compile_context>
chip_gen: v6e
topology: v6e:2x2x1
jax: 0.10.0
libtpu: 0.0.40
codegen_flags: <defaults>
</compile_context>

<pallas_src>
import jax
import jax.numpy as jnp
from jax.experimental import pallas as pl
from jax.experimental.pallas import tpu as pltpu


def _creator_kernel(x_ref,               # (B, F)  f32   original data (cont_stat)
                    rnd_ref,             # (B, F)  f32   uniform [0,1) random data
                    wg_ref,              # (F, F)  bf16  generator weight
                    bg_ref,              # (1, F)  f32   generator bias
                    wd_ref,              # (1, F)  f32   discriminator weight row
                    bd_ref,              # (1, 1)  f32   discriminator bias (SMEM)
                    out_ref):            # (B, 2)  f32   [:,0]=d_syn, [:,1]=d_ori
    # ---- generator: synthetic = tanh(random @ Wg + bg) ----
    # MXU in bf16 (native on v5e/v6e/v7x), accumulate in f32; elementwise in f32.
    synthetic = jnp.tanh(
        jnp.dot(rnd_ref[...].astype(jnp.bfloat16), wg_ref[...],
                preferred_element_type=jnp.float32)
        + bg_ref[...])

    # ---- discriminator: sigmoid(h @ Wd + bd), Wd is (F, 1) ----
    # N=1 matmul -> VPU multiply + lane reduction (XLU slot is otherwise idle).
    wd_row = wd_ref[...]                                   # (1, F) broadcast row
    bd = bd_ref[0, 0]                                      # SMEM scalar
    dsyn_logit = jnp.sum(synthetic * wd_row, axis=-1, keepdims=True) + bd
    dori_logit = jnp.sum(x_ref[...] * wd_row, axis=-1, keepdims=True) + bd

    # Single sigmoid dispatch + single lane-packed output store.
    out_ref[...] = jax.nn.sigmoid(
        jnp.concatenate([dsyn_logit, dori_logit], axis=-1))


def creator_forward(cat_stat, cont_stat, cat_dyn, cont_dyn, params, key):
    """Mirrors Creator.forward(cat_stat, cont_stat, cat_dyn, cont_dyn).

    Only cont_stat feeds the hot path (continuous-static generator branch);
    the other inputs are accepted for signature fidelity.
    """
    # TODO(synk): cat_stat / cat_dyn / cont_dyn are unused because the
    # reference forward only consumes a single undefined tensor `x`.
    del cat_stat, cat_dyn, cont_dyn
    B, F = cont_stat.shape
    wg, bg, wd, bd = params

    # random_data = torch.rand_like(x)  (uniform [0,1)); generated host-side so
    # the kernel also runs under CPU/interpret mode (pltpu PRNG has no CPU path).
    random_data = jax.random.uniform(key, (B, F), jnp.float32)

    wg_bf16 = wg.astype(jnp.bfloat16)       # pre-cast: halves weight DMA bytes
    wd_row = wd.reshape(1, F).astype(jnp.float32)
    bd_2d = bd.reshape(1, 1).astype(jnp.float32)

    out = pl.pallas_call(
        _creator_kernel,
        out_shape=jax.ShapeDtypeStruct((B, 2), jnp.float32),
        in_specs=[
            pl.BlockSpec(memory_space=pltpu.MemorySpace.VMEM),   # x (cont_stat)
            pl.BlockSpec(memory_space=pltpu.MemorySpace.VMEM),   # random_data
            pl.BlockSpec(memory_space=pltpu.MemorySpace.VMEM),   # Wg (bf16)
            pl.BlockSpec(memory_space=pltpu.MemorySpace.VMEM),   # bg
            pl.BlockSpec(memory_space=pltpu.MemorySpace.VMEM),   # Wd row
            pl.BlockSpec(memory_space=pltpu.MemorySpace.SMEM),   # bd scalar
        ],
        out_specs=pl.BlockSpec(memory_space=pltpu.MemorySpace.VMEM),
    )(cont_stat, random_data, wg_bf16, bg, wd_row, bd_2d)

    d_syn = out[:, 0:1]
    d_ori = out[:, 1:2]
    return d_syn, d_ori


def init_params(key, feature_size):
    """Deterministic parameter init (generator Linear(F,F), discriminator Linear(F,1))."""
    k1, k2, k3, k4 = jax.random.split(key, 4)
    scale_g = 1.0 / jnp.sqrt(feature_size)
    wg = jax.random.uniform(k1, (feature_size, feature_size), jnp.float32,
                            -scale_g, scale_g)
    bg = jax.random.uniform(k2, (1, feature_size), jnp.float32,
                            -scale_g, scale_g)
    wd = jax.random.uniform(k3, (feature_size, 1), jnp.float32,
                            -scale_g, scale_g)
    bd = jax.random.uniform(k4, (1, 1), jnp.float32, -scale_g, scale_g)
    return wg, bg, wd, bd


if __name__ == "__main__":
    B, S, F = 8, 8, 32
    key = jax.random.PRNGKey(0)
    k_cs, k_ks, k_cd, k_kd, k_params, k_rand = jax.random.split(key, 6)

    cat_stat = jax.random.normal(k_cs, (B, F), jnp.float32)
    cont_stat = jax.random.normal(k_ks, (B, F), jnp.float32)
    cat_dyn = jax.random.normal(k_cd, (B, S, F), jnp.float32)
    cont_dyn = jax.random.normal(k_kd, (B, S, F), jnp.float32)

    params = init_params(k_params, F)

    d_syn, d_ori = creator_forward(cat_stat, cont_stat, cat_dyn, cont_dyn,
                                   params, key=k_rand)
    jax.block_until_ready((d_syn, d_ori))
    assert d_syn.shape == (B, 1) and d_ori.shape == (B, 1)
    assert bool(jnp.all((d_syn > 0) & (d_syn < 1)))
    assert bool(jnp.all((d_ori > 0) & (d_ori < 1)))
    print("KERNEL_OK")
</pallas_src>

<mosaic_0001>
module attributes {stable_mosaic.version = 11 : i64} {
  func.func @_creator_kernel(%arg0: memref<8x32xf32, #tpu.memory_space<vmem>>, %arg1: memref<8x32xf32, #tpu.memory_space<vmem>>, %arg2: memref<32x32xbf16, #tpu.memory_space<vmem>>, %arg3: memref<1x32xf32, #tpu.memory_space<vmem>>, %arg4: memref<1x32xf32, #tpu.memory_space<vmem>>, %arg5: memref<1x1xf32, #tpu.memory_space<smem>>, %arg6: memref<8x2xf32, #tpu.memory_space<vmem>>) attributes {dimension_semantics = [], scalar_prefetch = 0 : i64, scratch_operands = 0 : i64, tpu.core_type = #tpu.core_type<tc>} {
    %c0 = arith.constant 0 : index
    %c0_0 = arith.constant 0 : index
    %0 = vector.load %arg1[%c0, %c0_0] : memref<8x32xf32, #tpu.memory_space<vmem>>, vector<8x32xf32>
    %1 = arith.truncf %0 : vector<8x32xf32> to vector<8x32xbf16>
    %c0_1 = arith.constant 0 : index
    %c0_2 = arith.constant 0 : index
    %2 = vector.load %arg2[%c0_1, %c0_2] : memref<32x32xbf16, #tpu.memory_space<vmem>>, vector<32x32xbf16>
    %cst = arith.constant dense<0.000000e+00> : vector<8x32xf32>
    %3 = tpu.matmul %1, %2, %cst {dimension_numbers = #tpu.dot_dimension_numbers<[1], [0], [0], [1], [0, 0, 1, 1], [], []>} : vector<8x32xbf16>, vector<32x32xbf16>, vector<8x32xf32> -> vector<8x32xf32>
    %c0_3 = arith.constant 0 : index
    %c0_4 = arith.constant 0 : index
    %4 = vector.load %arg3[%c0_3, %c0_4] : memref<1x32xf32, #tpu.memory_space<vmem>>, vector<1x32xf32>
    %5 = vector.broadcast %4 : vector<1x32xf32> to vector<8x32xf32>
    %6 = arith.addf %3, %5 : vector<8x32xf32>
    %7 = math.tanh %6 : vector<8x32xf32>
    %c0_5 = arith.constant 0 : index
    %c0_6 = arith.constant 0 : index
    %8 = vector.load %arg4[%c0_5, %c0_6] : memref<1x32xf32, #tpu.memory_space<vmem>>, vector<1x32xf32>
    %c0_7 = arith.constant 0 : index
    %c0_8 = arith.constant 0 : index
    %9 = memref.load %arg5[%c0_7, %c0_8] : memref<1x1xf32, #tpu.memory_space<smem>>
    %10 = vector.broadcast %8 : vector<1x32xf32> to vector<8x32xf32>
    %11 = arith.mulf %7, %10 : vector<8x32xf32>
    %cst_9 = arith.constant dense<0.000000e+00> : vector<8xf32>
    %12 = vector.multi_reduction <add>, %11, %cst_9 [1] : vector<8x32xf32> to vector<8xf32>
    %13 = vector.shape_cast %12 : vector<8xf32> to vector<8x1xf32>
    %14 = vector.broadcast %9 : f32 to vector<8x1xf32>
    %15 = arith.addf %13, %14 : vector<8x1xf32>
    %c0_10 = arith.constant 0 : index
    %c0_11 = arith.constant 0 : index
    %16 = vector.load %arg0[%c0_10, %c0_11] : memref<8x32xf32, #tpu.memory_space<vmem>>, vector<8x32xf32>
    %17 = vector.broadcast %8 : vector<1x32xf32> to vector<8x32xf32>
    %18 = arith.mulf %16, %17 : vector<8x32xf32>
    %cst_12 = arith.constant dense<0.000000e+00> : vector<8xf32>
    %19 = vector.multi_reduction <add>, %18, %cst_12 [1] : vector<8x32xf32> to vector<8xf32>
    %20 = vector.shape_cast %19 : vector<8xf32> to vector<8x1xf32>
    %21 = vector.broadcast %9 : f32 to vector<8x1xf32>
    %22 = arith.addf %20, %21 : vector<8x1xf32>
    %23 = tpu.concatenate %15, %22 in 1 : vector<8x1xf32>, vector<8x1xf32> -> vector<8x2xf32>
    %24 = arith.negf %23 : vector<8x2xf32>
    %25 = math.exp %24 : vector<8x2xf32>
    %cst_13 = arith.constant 1.000000e+00 : f32
    %26 = vector.broadcast %cst_13 : f32 to vector<8x2xf32>
    %27 = arith.addf %26, %25 : vector<8x2xf32>
    %28 = arith.divf %26, %27 : vector<8x2xf32>
    %c0_14 = arith.constant 0 : index
    %c0_15 = arith.constant 0 : index
    %29 = vector.load %arg6[%c0_14, %c0_15] : memref<8x2xf32, #tpu.memory_space<vmem>>, vector<8x2xf32>
    tpu.vector_store %arg6[%c0_14, %c0_15], %28 {strides = array<i32>} : memref<8x2xf32, #tpu.memory_space<vmem>>, vector<8x2xf32>,
    return
  }
}

</mosaic_0001>

<bundles_post_ra>
// kernel: tpu_custom_call.1
= control target key start
LH: loop header
LB: loop body
LE: loop exit
PB: predicated region body
PF: predicated region fallthrough
CT: control target
= control target key end

     0   :  { %12 = vsyncpa [#allocation4], 0  ;;  %s330_s0 = inlined_call_operand.hbm [shape: f32[8,32], index: 0, kind: input, shape index: {}]   ;;  %s331_s1 = inlined_call_operand.hbm [shape: f32[8,32], index: 1, kind: input, shape index: {}]   ;;  %s332_s2 = inlined_call_operand.hbm [shape: bf16[32,32], index: 2, kind: input, shape index: {}]   ;;  %s333_s3 = inlined_call_operand.vmem [shape: f32[1,32], index: 3, kind: input, shape index: {}]   ;;  %s334_s4 = inlined_call_operand.vmem [shape: f32[1,32], index: 4, kind: input, shape index: {}]   ;;  %s335_s5 = inlined_call_operand.<no memory space> [shape: f32[1,1], index: 5, kind: input, shape index: {}]   ;;  %s336_s6 = inlined_call_operand.vmem [shape: f32[8,2], index: 6, kind: output, shape index: {}]  }
   0x1   :  { %13 = vsyncpa [#allocation6], 0  ;;  %s264_s21 = smov [#allocation5]   ;;  %s265_s23 = smov [#allocation3]  }
   0x2   :  { %s30_s22 = sshll.u32 %s264_s21, 4  ;;  %s20_s24 = sshll.u32 %s265_s23, 4  ;;  %s31_s22 = int_to_ptr.vmem [resolvable:$true] %s30_s22  ;;  %s21_s24 = int_to_ptr.vmem [resolvable:$true] %s20_s24 }
   0x3   :  { %s208_s25 = scalar_lea.vmem %s31_s22, 128  ;;  %p213_p1 = scmp.lt.s32.totalorder %s31_s22, %s31_s22 }
   0x4   :  { %p209_p0 = scmp.ne.s32.totalorder %s31_s22, %s208_s25  ;;  %p214_p2 = scmp.lt.s32.totalorder %s208_s25, %s208_s25 }
   0x6   :  { %p215_p3 = por %p214_p2, %p213_p1 }
   0x8   :  { %p216_p4 = pnand %p215_p3, %p209_p0 }
   0xa   :  { %219 = shalt.err (!%p216_p4)
}
   0xb   :  { %33 = dma.hbm_to_vmem [thread:$0]  %s331_s1, 128, %s31_s22, [#allocation6]  }
   0xc   :  { %s228_s28 = scalar_lea.vmem %s21_s24, 128  ;;  %p233_p6 = scmp.lt.s32.totalorder %s21_s24, %s21_s24 }
   0xd   :  { %p229_p5 = scmp.ne.s32.totalorder %s21_s24, %s228_s28  ;;  %p234_p7 = scmp.lt.s32.totalorder %s228_s28, %s228_s28 }
   0xf   :  { %p235_p8 = por %p234_p7, %p233_p6 }
  0x11   :  { %p236_p9 = pnand %p235_p8, %p229_p5 }
  0x13   :  { %239 = shalt.err (!%p236_p9)
}
  0x14   :  { %23 = dma.hbm_to_vmem [thread:$0]  %s330_s0, 128, %s21_s24, [#allocation4]  }
  0x15   :  { %s266_s7 = smov [#allocation7]  }
  0x16   :  { %s39_s8 = sshll.u32 %s266_s7, 4  ;;  %s40_s8 = int_to_ptr.vmem [resolvable:$true] %s39_s8 }
  0x17   :  { %s248_s9 = scalar_lea.vmem %s40_s8, 256  ;;  %p253_p11 = scmp.lt.s32.totalorder %s40_s8, %s40_s8 }
  0x18   :  { %p249_p10 = scmp.ne.s32.totalorder %s40_s8, %s248_s9  ;;  %p254_p12 = scmp.lt.s32.totalorder %s248_s9, %s248_s9 }
  0x1a   :  { %p255_p13 = por %p254_p12, %p253_p11 }
  0x1c   :  { %p256_p0 = pnand %p255_p13, %p249_p10 }
  0x1e   :  { %259 = shalt.err (!%p256_p0)
}
  0x1f   :  { %s267_s1 = smov 64   ;;  %s268_s10 = smov 4  }
  0x20   :  { %45 = dma.hbm_to_vmem [thread:$0]  %s332_s2, 256, %s40_s8, [#allocation6], %s267_s1, %s267_s1, %s268_s10  }
  0x21   :  { %260 = dma.done.wait [#allocation4], 128  }
  0x22   :  { %261 = vsyncadd [#allocation4], 4294967168 }
  0x23   :  { %262 = dma.done.wait [#allocation6], 384  }
  0x24   :  { %263 = vsyncadd [#allocation6], 4294966912  ;;  %v269_v0 = vmov 0.0   ;;  %vm270_vm0 = vmmov 0   ;;  %v192_v1 = vld [vmem:[#allocation7 + $0x8] sm:$0xff]   ;;  %v193_v2 = vld [vmem:[#allocation7] sm:$0xff]   ;;  %v144_v19 = vstv %s335_s5 }
  0x25   :  { %177 = vmatprep.subr.bf16.mxu0 %v269_v0  ;;  %181 = vmatprep.mubr.msk.bf16.mxu0 %vm270_vm0, %v269_v0  ;;  %v62_v3 = vld [vmem:[#allocation5] sm:$0xff]  ;;  %vm87_vm1 = vcmask 261120   ;;  %v168_v5 = vld [vmem:[%s333_s3] ss:$0 sm:$0xff]  ;;  %vm152_vm2 = vcmask 7168   ;;  %vm160_vm3 = vcmask 15360  }
  0x26   :  { %178 = vmatpush3.bf16.msra.mxu0 %v192_v1  ;;  %v63_v4 = vpack.c.bf16 %v62_v3, %v62_v3  ;;  %v172_v11 = vld [vmem:[%s334_s4] ss:$0 sm:$0xff] }
  0x27   :  { %179 = vmatprep.subr.bf16.mxu0 %v269_v0  ;;  %v146_v12 = vld [vmem:[#allocation3] sm:$0xff] }
  0x28   :  { %v147_v15 = vmul.f32 %v172_v11, %v146_v12 }
  0x2a   :  { %180 = vmatpush3.bf16.msra.mxu0 %v193_v2  ;;  %v148_v17 = vsel %vm87_vm1, %v147_v15, 0.0 }
  0x2d   :  { %182 = vmatmul.mubr.msk.bf16.vlgmr.msra.gmra.mxu0 %vm87_vm1, %v63_v4 }
  0xed   :  { %v125_v6 = vpop.f32.mrf.mxu0 }
  0xee   :  { %v126_v7 = vadd.f32 %v168_v5, %v125_v6 }
  0xef   :  { %v183_v8 = vpop.f32.mrf.mxu0 }
  0xf0   :  { %194 = vtanh.f32 %v126_v7 }
  0xf1   :  { %v128_v9 = vpop.f32.mrf.mxu0 }
  0xf3   :  { %v184_v10 = vpop.f32.mrf.mxu0 }
  0xfd   :  { %v195_v13 = vpop.eup %194 }
  0xfe   :  { %v140_v14 = vmul.f32 %v195_v13, %v172_v11 }
 0x100   :  { %v141_v16 = vsel %vm87_vm1, %v140_v14, 0.0 }
 0x101   :  { %142 = vadd.xlane.f32.xlu0 %v141_v16 }
 0x105   :  { %149 = vadd.xlane.f32.xlu0 %v148_v17 }
 0x18a   :  { %v143_v18 = vpop.xlane.xlu0 %142 }
 0x18b   :  { %v145_v21 = vadd.f32 %v144_v19, %v143_v18 }
 0x18e   :  { %v150_v20 = vpop.xlane.xlu0 %149 }
 0x18f   :  { %v151_v22 = vadd.f32 %v150_v20, %v144_v19 }
 0x191   :  { %v153_v23 = vsel %vm152_vm2, %v145_v21, %v151_v22 }
 0x192   :  { %v173_v24 = vmul.f32 -1.442695, %v153_v23 }
 0x194   :  { %196 = vpow2.f32 %v173_v24 }
 0x1a1   :  { %v197_v25 = vpop.eup %196 }
 0x1a2   :  { %v157_v26 = vadd.f32 1.0, %v197_v25 }
 0x1a4   :  { %198 = vrcp.f32 %v157_v26 }
 0x1b1   :  { %v199_v27 = vpop.eup %198 }
 0x1b2   :  { %161 = vst.msk [vmem:[%s336_s6] sm:$0xff] %vm160_vm3, %v199_v27 }
 0x1b3   :  { %166 = vsyncpa [#allocation4], 1 }
 0x1b4   :  { %167 = vsyncpa [#allocation6], 1 }

</bundles_post_ra>
